<compile_context>
chip_gen: v5e
topology: v5e:2x2
jax: 0.10.0
libtpu: 0.0.40
codegen_flags: <defaults>
</compile_context>

<pallas_src>
import functools

import jax
import jax.numpy as jnp
from jax import lax
from jax.experimental import pallas as pl
from jax.experimental.pallas import tpu as pltpu


_INV_SQRT2 = 0.7071067811865476
_PAD = 128  # lane-dense width used for every fused layer


def _gelu_exact(v):
    # torch.nn.GELU default: exact erf-based GELU (multiply by 1/sqrt(2)
    # instead of dividing -- <=1 ulp difference, fewer VALU ops).
    return 0.5 * v * (1.0 + lax.erf(v * _INV_SQRT2))


def fused_actor_critic_kernel(x_ref, w_ref, b_ref, out_ref, *, action_n, k_in):
    """One fused pass over the block-diagonal actor+critic MLP.

    x_ref:   (TILE_B, k_in)  input (features padded only to a multiple of 8)
    w_ref:   (L, 128, 128)   per-layer fused (block-diagonal) weights
    b_ref:   (L, 1, 128)     per-layer fused biases
    out_ref: (TILE_B, 128)   probs in lanes [0, action_n), value at lane
                             action_n, zeros elsewhere
    """
    n_layers = w_ref.shape[0]
    x = x_ref[...].astype(jnp.float32)

    # Layer 0: only the first k_in rows of the fused weight are nonzero, so
    # contract against that slice (keeps the input DMA narrow).
    h = jnp.dot(x, w_ref[0, :k_in, :], preferred_element_type=jnp.float32)
    h = _gelu_exact(h + b_ref[0])

    # Remaining hidden layers: one matmul per layer covers both heads.
    for l in range(1, n_layers - 1):
        h = _gelu_exact(
            jnp.dot(h, w_ref[l], preferred_element_type=jnp.float32) + b_ref[l]
        )

    # Final layer: lanes [0, action_n) = actor logits, lane action_n = value.
    z = jnp.dot(h, w_ref[n_layers - 1], preferred_element_type=jnp.float32)
    z = z + b_ref[n_layers - 1]

    lane = lax.broadcasted_iota(jnp.int32, z.shape, 1)
    is_logit = lane < action_n

    # Softmax restricted to the logit lanes (exp(-inf) = 0 on the rest).
    masked = jnp.where(is_logit, z, -jnp.inf)
    m = jnp.max(masked, axis=-1, keepdims=True)
    e = jnp.exp(masked - m)
    denom = jnp.sum(e, axis=-1, keepdims=True)
    inv = pl.reciprocal(denom, approx=False)  # exact; one reciprocal per row
    probs = e * inv

    # Lane-dense combined output: probs | value | zeros.
    out = jnp.where(lane == action_n, z, probs)
    out_ref[...] = out.astype(out_ref.dtype)


def init_params(key, num_inputs, h1, h2, h3, out_n, dtype=jnp.float32):
    """Deterministic synthetic init for one 4-layer MLP head.

    Returns a flat tuple (w1, b1, ..., w4, b4) with weights stored as
    (in_features, out_features) and biases as (1, out_features).
    """
    dims = [(num_inputs, h1), (h1, h2), (h2, h3), (h3, out_n)]
    params = []
    for i, (din, dout) in enumerate(dims):
        kw, kb = jax.random.split(jax.random.fold_in(key, i))
        bound = 1.0 / jnp.sqrt(jnp.float32(din))
        w = jax.random.uniform(kw, (din, dout), dtype, -bound, bound)
        b = jax.random.uniform(kb, (1, dout), dtype, -bound, bound)
        params += [w, b]
    return tuple(params)


def pack_params(actor_params, critic_params, pad=_PAD):
    """Pack the two heads into fused block-diagonal (L, pad, pad) weights and
    (L, 1, pad) biases.

    Layer 0 reads the shared input, so actor/critic weights are concatenated
    along the output dim; layers >=1 are block-diagonal.  The final layer maps
    the actor hidden to lanes [0, action_n) and the critic hidden to lane
    action_n.
    """
    aw, ab = list(actor_params[0::2]), list(actor_params[1::2])
    cw, cb = list(critic_params[0::2]), list(critic_params[1::2])
    n_layers = len(aw)

    W = jnp.zeros((n_layers, pad, pad), jnp.float32)
    B = jnp.zeros((n_layers, 1, pad), jnp.float32)

    a_in_off, c_in_off = 0, 0  # layer 0: both heads read the raw input
    for l in range(n_layers):
        a_di, a_do = aw[l].shape
        c_di, c_do = cw[l].shape
        assert a_do + c_do <= pad and max(a_di, c_di) <= pad

        Wl = jnp.zeros((pad, pad), jnp.float32)
        Wl = Wl.at[a_in_off:a_in_off + a_di, 0:a_do].set(aw[l].astype(jnp.float32))
        Wl = Wl.at[c_in_off:c_in_off + c_di, a_do:a_do + c_do].set(
            cw[l].astype(jnp.float32))
        Bl = jnp.zeros((1, pad), jnp.float32)
        Bl = Bl.at[:, 0:a_do].set(ab[l].astype(jnp.float32))
        Bl = Bl.at[:, a_do:a_do + c_do].set(cb[l].astype(jnp.float32))

        W = W.at[l].set(Wl)
        B = B.at[l].set(Bl)

        # Next layer: actor hidden occupies lanes [0, a_do), critic hidden
        # occupies lanes [a_do, a_do + c_do).
        a_in_off, c_in_off = 0, a_do
    return W, B


def _round_up(n, m):
    return ((n + m - 1) // m) * m


def _choose_tiling(batch):
    """Pick (tile_b, b_padded): large tiles (cap 2048) for step-overhead
    amortization, but keep >= 2 grid steps when the batch allows so the
    'parallel' axis can shard across v7x's two TensorCores."""
    b8 = _round_up(max(batch, 1), 8)
    cap = 2048
    if b8 >= 16:
        half = _round_up((b8 + 1) // 2, 8)
        tile = min(cap, half)
    else:
        tile = b8
    b_padded = _round_up(b8, tile)
    return tile, b_padded


@functools.partial(jax.jit, static_argnames=("action_n",))
def actor_critic_forward(x, w_packed, b_packed, action_n):
    B, num_inputs = x.shape
    n_layers, pad, _ = w_packed.shape

    k_in = _round_up(num_inputs, 8)        # feature pad only to a sublane multiple
    tile_b, b_padded = _choose_tiling(B)
    grid = (b_padded // tile_b,)

    xf = x.astype(jnp.float32)
    if (b_padded, k_in) != (B, num_inputs):
        xf = jnp.pad(xf, ((0, b_padded - B), (0, k_in - num_inputs)))

    kernel = functools.partial(
        fused_actor_critic_kernel, action_n=action_n, k_in=k_in)

    cost = pl.CostEstimate(
        flops=2 * b_padded * (k_in * pad + (n_layers - 1) * pad * pad),
        transcendentals=b_padded * pad,  # advisory only (exp / reciprocal)
        bytes_accessed=4 * (xf.size + w_packed.size + b_packed.size
                            + b_padded * pad),
    )

    out = pl.pallas_call(
        kernel,
        out_shape=jax.ShapeDtypeStruct((b_padded, pad), jnp.float32),
        grid=grid,
        in_specs=[
            # x: last dim equals the full (narrow) array dim -> legal block.
            pl.BlockSpec((tile_b, k_in), lambda i: (i, 0)),
            # Weights/biases pinned to block 0 -> stay VMEM-resident across
            # the batch grid (no re-DMA per step).
            pl.BlockSpec((n_layers, pad, pad), lambda i: (0, 0, 0)),
            pl.BlockSpec((n_layers, 1, pad), lambda i: (0, 0, 0)),
        ],
        out_specs=pl.BlockSpec((tile_b, pad), lambda i: (i, 0)),
        compiler_params=pltpu.CompilerParams(
            dimension_semantics=("parallel",),
            vmem_limit_bytes=32 * 1024 * 1024,
        ),
        cost_estimate=cost,
    )(xf, w_packed, b_packed)

    probs = out[:B, :action_n]
    values = out[:B, action_n:action_n + 1]
    return probs, values


def reference_forward(x, actor_params, critic_params):
    """Plain-JAX reference mirroring the PyTorch module (unfused heads)."""

    def mlp(h, params):
        w1, b1, w2, b2, w3, b3, w4, b4 = params
        h = _gelu_exact(jnp.dot(h, w1) + b1)
        h = _gelu_exact(jnp.dot(h, w2) + b2)
        h = _gelu_exact(jnp.dot(h, w3) + b3)
        return jnp.dot(h, w4) + b4

    xf = x.astype(jnp.float32)
    logits = mlp(xf, actor_params)
    probs = jax.nn.softmax(logits, axis=-1)
    values = mlp(xf, critic_params)
    return probs, values


if __name__ == "__main__":
    # Small shapes consistent with the module's forward.
    B = 8            # batch
    NUM_INPUTS = 16  # num_inputs
    H1, H2, H3 = 32, 32, 32
    ACTION_N = 8

    key = jax.random.PRNGKey(0)
    kx, ka, kc = jax.random.split(key, 3)

    x = jax.random.normal(kx, (B, NUM_INPUTS), jnp.float32)
    actor_params = init_params(ka, NUM_INPUTS, H1, H2, H3, ACTION_N)
    critic_params = init_params(kc, NUM_INPUTS, H1, H2, H3, 1)

    # Pack the two heads into fused block-diagonal operands (3 input DMAs).
    w_packed, b_packed = pack_params(actor_params, critic_params)

    probs, values = actor_critic_forward(x, w_packed, b_packed, ACTION_N)
    jax.block_until_ready((probs, values))

    # Correctness check against the plain-JAX (unfused) reference.
    ref_probs, ref_values = reference_forward(x, actor_params, critic_params)
    assert probs.shape == (B, ACTION_N)
    assert values.shape == (B, 1)
    assert jnp.allclose(probs, ref_probs, atol=1e-5, rtol=1e-5)
    assert jnp.allclose(values, ref_values, atol=1e-5, rtol=1e-5)
    assert jnp.allclose(jnp.sum(probs, axis=-1), 1.0, atol=1e-5)

    print("KERNEL_OK")
</pallas_src>

<mosaic_0001>
module attributes {stable_mosaic.version = 11 : i64} {
  func.func @fused_actor_critic_kernel(%arg0: i32, %arg1: memref<8x16xf32, #tpu.memory_space<vmem>>, %arg2: memref<4x128x128xf32, #tpu.memory_space<vmem>>, %arg3: memref<4x1x128xf32, #tpu.memory_space<vmem>>, %arg4: memref<8x128xf32, #tpu.memory_space<vmem>>) attributes {dimension_semantics = [#tpu.dimension_semantics<parallel>], iteration_bounds = array<i64: 1>, scalar_prefetch = 0 : i64, scratch_operands = 0 : i64, tpu.core_type = #tpu.core_type<tc>, window_params = [{transform_indices = @transform_0, window_bounds = array<i64: 8, 16>}, {pipeline_mode = #tpu.pipeline_mode<synchronous>, transform_indices = @transform_1, window_bounds = array<i64: 4, 128, 128>}, {pipeline_mode = #tpu.pipeline_mode<synchronous>, transform_indices = @transform_2, window_bounds = array<i64: 4, 1, 128>}, {transform_indices = @transform_3, window_bounds = array<i64: 8, 128>}]} {
    %c0 = arith.constant 0 : index
    %c0_0 = arith.constant 0 : index
    %0 = vector.load %arg1[%c0, %c0_0] : memref<8x16xf32, #tpu.memory_space<vmem>>, vector<8x16xf32>
    %c0_1 = arith.constant 0 : index
    %c0_2 = arith.constant 0 : index
    %c0_3 = arith.constant 0 : index
    %1 = vector.load %arg2[%c0_1, %c0_2, %c0_3] : memref<4x128x128xf32, #tpu.memory_space<vmem>>, vector<1x16x128xf32>
    %2 = vector.shape_cast %1 : vector<1x16x128xf32> to vector<16x128xf32>
    %cst = arith.constant dense<0.000000e+00> : vector<8x128xf32>
    %3 = tpu.matmul %0, %2, %cst {dimension_numbers = #tpu.dot_dimension_numbers<[1], [0], [0], [1], [0, 0, 1, 1], [], []>} : vector<8x16xf32>, vector<16x128xf32>, vector<8x128xf32> -> vector<8x128xf32>
    %c0_4 = arith.constant 0 : index
    %c0_5 = arith.constant 0 : index
    %c0_6 = arith.constant 0 : index
    %4 = vector.load %arg3[%c0_4, %c0_5, %c0_6] : memref<4x1x128xf32, #tpu.memory_space<vmem>>, vector<1x1x128xf32>
    %5 = vector.shape_cast %4 : vector<1x1x128xf32> to vector<1x128xf32>
    %6 = vector.broadcast %5 : vector<1x128xf32> to vector<8x128xf32>
    %7 = arith.addf %3, %6 : vector<8x128xf32>
    %cst_7 = arith.constant 5.000000e-01 : f32
    %8 = vector.broadcast %cst_7 : f32 to vector<8x128xf32>
    %9 = arith.mulf %8, %7 : vector<8x128xf32>
    %cst_8 = arith.constant 0.707106769 : f32
    %10 = vector.broadcast %cst_8 : f32 to vector<8x128xf32>
    %11 = arith.mulf %7, %10 : vector<8x128xf32>
    %12 = math.erf %11 : vector<8x128xf32>
    %cst_9 = arith.constant 1.000000e+00 : f32
    %13 = vector.broadcast %cst_9 : f32 to vector<8x128xf32>
    %14 = arith.addf %13, %12 : vector<8x128xf32>
    %15 = arith.mulf %9, %14 : vector<8x128xf32>
    %c1 = arith.constant 1 : index
    %c0_10 = arith.constant 0 : index
    %c0_11 = arith.constant 0 : index
    %16 = vector.load %arg2[%c1, %c0_10, %c0_11] : memref<4x128x128xf32, #tpu.memory_space<vmem>>, vector<1x128x128xf32>
    %17 = vector.shape_cast %16 : vector<1x128x128xf32> to vector<128x128xf32>
    %cst_12 = arith.constant dense<0.000000e+00> : vector<8x128xf32>
    %18 = tpu.matmul %15, %17, %cst_12 {dimension_numbers = #tpu.dot_dimension_numbers<[1], [0], [0], [1], [0, 0, 1, 1], [], []>} : vector<8x128xf32>, vector<128x128xf32>, vector<8x128xf32> -> vector<8x128xf32>
    %c1_13 = arith.constant 1 : index
    %c0_14 = arith.constant 0 : index
    %c0_15 = arith.constant 0 : index
    %19 = vector.load %arg3[%c1_13, %c0_14, %c0_15] : memref<4x1x128xf32, #tpu.memory_space<vmem>>, vector<1x1x128xf32>
    %20 = vector.shape_cast %19 : vector<1x1x128xf32> to vector<1x128xf32>
    %21 = vector.broadcast %20 : vector<1x128xf32> to vector<8x128xf32>
    %22 = arith.addf %18, %21 : vector<8x128xf32>
    %cst_16 = arith.constant 5.000000e-01 : f32
    %23 = vector.broadcast %cst_16 : f32 to vector<8x128xf32>
    %24 = arith.mulf %23, %22 : vector<8x128xf32>
    %cst_17 = arith.constant 0.707106769 : f32
    %25 = vector.broadcast %cst_17 : f32 to vector<8x128xf32>
    %26 = arith.mulf %22, %25 : vector<8x128xf32>
    %27 = math.erf %26 : vector<8x128xf32>
    %cst_18 = arith.constant 1.000000e+00 : f32
    %28 = vector.broadcast %cst_18 : f32 to vector<8x128xf32>
    %29 = arith.addf %28, %27 : vector<8x128xf32>
    %30 = arith.mulf %24, %29 : vector<8x128xf32>
    %c2 = arith.constant 2 : index
    %c0_19 = arith.constant 0 : index
    %c0_20 = arith.constant 0 : index
    %31 = vector.load %arg2[%c2, %c0_19, %c0_20] : memref<4x128x128xf32, #tpu.memory_space<vmem>>, vector<1x128x128xf32>
    %32 = vector.shape_cast %31 : vector<1x128x128xf32> to vector<128x128xf32>
    %cst_21 = arith.constant dense<0.000000e+00> : vector<8x128xf32>
    %33 = tpu.matmul %30, %32, %cst_21 {dimension_numbers = #tpu.dot_dimension_numbers<[1], [0], [0], [1], [0, 0, 1, 1], [], []>} : vector<8x128xf32>, vector<128x128xf32>, vector<8x128xf32> -> vector<8x128xf32>
    %c2_22 = arith.constant 2 : index
    %c0_23 = arith.constant 0 : index
    %c0_24 = arith.constant 0 : index
    %34 = vector.load %arg3[%c2_22, %c0_23, %c0_24] : memref<4x1x128xf32, #tpu.memory_space<vmem>>, vector<1x1x128xf32>
    %35 = vector.shape_cast %34 : vector<1x1x128xf32> to vector<1x128xf32>
    %36 = vector.broadcast %35 : vector<1x128xf32> to vector<8x128xf32>
    %37 = arith.addf %33, %36 : vector<8x128xf32>
    %cst_25 = arith.constant 5.000000e-01 : f32
    %38 = vector.broadcast %cst_25 : f32 to vector<8x128xf32>
    %39 = arith.mulf %38, %37 : vector<8x128xf32>
    %cst_26 = arith.constant 0.707106769 : f32
    %40 = vector.broadcast %cst_26 : f32 to vector<8x128xf32>
    %41 = arith.mulf %37, %40 : vector<8x128xf32>
    %42 = math.erf %41 : vector<8x128xf32>
    %cst_27 = arith.constant 1.000000e+00 : f32
    %43 = vector.broadcast %cst_27 : f32 to vector<8x128xf32>
    %44 = arith.addf %43, %42 : vector<8x128xf32>
    %45 = arith.mulf %39, %44 : vector<8x128xf32>
    %c3 = arith.constant 3 : index
    %c0_28 = arith.constant 0 : index
    %c0_29 = arith.constant 0 : index
    %46 = vector.load %arg2[%c3, %c0_28, %c0_29] : memref<4x128x128xf32, #tpu.memory_space<vmem>>, vector<1x128x128xf32>
    %47 = vector.shape_cast %46 : vector<1x128x128xf32> to vector<128x128xf32>
    %cst_30 = arith.constant dense<0.000000e+00> : vector<8x128xf32>
    %48 = tpu.matmul %45, %47, %cst_30 {dimension_numbers = #tpu.dot_dimension_numbers<[1], [0], [0], [1], [0, 0, 1, 1], [], []>} : vector<8x128xf32>, vector<128x128xf32>, vector<8x128xf32> -> vector<8x128xf32>
    %c3_31 = arith.constant 3 : index
    %c0_32 = arith.constant 0 : index
    %c0_33 = arith.constant 0 : index
    %49 = vector.load %arg3[%c3_31, %c0_32, %c0_33] : memref<4x1x128xf32, #tpu.memory_space<vmem>>, vector<1x1x128xf32>
    %50 = vector.shape_cast %49 : vector<1x1x128xf32> to vector<1x128xf32>
    %51 = vector.broadcast %50 : vector<1x128xf32> to vector<8x128xf32>
    %52 = arith.addf %48, %51 : vector<8x128xf32>
    %53 = tpu.iota {dimensions = array<i32: 1>} : vector<8x128xi32>
    %c8_i32 = arith.constant 8 : i32
    %54 = vector.broadcast %c8_i32 : i32 to vector<8x128xi32>
    %55 = arith.cmpi slt, %53, %54 : vector<8x128xi32>
    %cst_34 = arith.constant 0xFF800000 : f32
    %56 = vector.broadcast %cst_34 : f32 to vector<8x128xf32>
    %57 = arith.select %55, %52, %56 : vector<8x128xi1>, vector<8x128xf32>
    %cst_35 = arith.constant dense<0xFF800000> : vector<8xf32>
    %58 = vector.multi_reduction <maximumf>, %57, %cst_35 [1] : vector<8x128xf32> to vector<8xf32>
    %59 = vector.shape_cast %58 : vector<8xf32> to vector<8x1xf32>
    %60 = vector.broadcast %59 : vector<8x1xf32> to vector<8x128xf32>
    %61 = arith.subf %57, %60 : vector<8x128xf32>
    %62 = math.exp %61 : vector<8x128xf32>
    %cst_36 = arith.constant dense<0.000000e+00> : vector<8xf32>
    %63 = vector.multi_reduction <add>, %62, %cst_36 [1] : vector<8x128xf32> to vector<8xf32>
    %64 = vector.shape_cast %63 : vector<8xf32> to vector<8x1xf32>
    %65 = tpu.reciprocal %64 : vector<8x1xf32> -> vector<8x1xf32>
    %66 = vector.broadcast %65 : vector<8x1xf32> to vector<8x128xf32>
    %67 = arith.mulf %62, %66 : vector<8x128xf32>
    %c8_i32_37 = arith.constant 8 : i32
    %68 = vector.broadcast %c8_i32_37 : i32 to vector<8x128xi32>
    %69 = arith.cmpi eq, %53, %68 : vector<8x128xi32>
    %70 = arith.select %69, %52, %67 : vector<8x128xi1>, vector<8x128xf32>
    %c0_38 = arith.constant 0 : index
    %c0_39 = arith.constant 0 : index
    %71 = vector.load %arg4[%c0_38, %c0_39] : memref<8x128xf32, #tpu.memory_space<vmem>>, vector<8x128xf32>
    tpu.vector_store %arg4[%c0_38, %c0_39], %70 {strides = array<i32>} : memref<8x128xf32, #tpu.memory_space<vmem>>, vector<8x128xf32>,
    return
  }
  func.func @transform_0(%arg0: i32) -> (i32, i32) {
    %c0_i32 = arith.constant 0 : i32
    %c0_i32_0 = arith.constant 0 : i32
    return %arg0, %c0_i32 : i32, i32
  }
  func.func @transform_1(%arg0: i32) -> (i32, i32, i32) {
    %c0_i32 = arith.constant 0 : i32
    %c0_i32_0 = arith.constant 0 : i32
    %c0_i32_1 = arith.constant 0 : i32
    %c0_i32_2 = arith.constant 0 : i32
    return %c0_i32, %c0_i32_0, %c0_i32_1 : i32, i32, i32
  }
  func.func @transform_2(%arg0: i32) -> (i32, i32, i32) {
    %c0_i32 = arith.constant 0 : i32
    %c0_i32_0 = arith.constant 0 : i32
    %c0_i32_1 = arith.constant 0 : i32
    %c0_i32_2 = arith.constant 0 : i32
    return %c0_i32, %c0_i32_0, %c0_i32_1 : i32, i32, i32
  }
  func.func @transform_3(%arg0: i32) -> (i32, i32) {
    %c0_i32 = arith.constant 0 : i32
    %c0_i32_0 = arith.constant 0 : i32
    return %arg0, %c0_i32 : i32, i32
  }
}

</mosaic_0001>

<bundles_post_ra>
// kernel: actor_critic_forward.1
= control target key start
LH: loop header
LB: loop body
LE: loop exit
PB: predicated region body
PF: predicated region fallthrough
CT: control target
= control target key end

     0   :  { %8 = vsyncpa [#allocation3], 0  ;;  %s523_s0 = inlined_call_operand.hbm [shape: f32[8,16], index: 0, kind: input, shape index: {}]   ;;  %s524_s1 = inlined_call_operand.hbm [shape: f32[4,128,128], index: 1, kind: input, shape index: {}]   ;;  %s525_s2 = inlined_call_operand.hbm [shape: f32[4,1,128], index: 2, kind: input, shape index: {}]   ;;  %s526_s3 = inlined_call_operand.vmem [shape: f32[8,128], index: 3, kind: output, shape index: {}]  }
   0x1   :  { %9 = vsyncpa [#allocation5], 0  ;;  %s25_s14 = sshll.u32 %s524_s1, 4  ;;  %s484_s15 = smov [#allocation4]   ;;  %s26_s14 = int_to_ptr.hbm [resolvable:$true] %s25_s14 }
   0x2   :  { %s27_s16 = sshll.u32 %s484_s15, 4  ;;  %s15_s19 = sshll.u32 %s523_s0, 4  ;;  %s28_s16 = int_to_ptr.vmem [resolvable:$true] %s27_s16  ;;  %s16_s19 = int_to_ptr.hbm [resolvable:$true] %s15_s19 }
   0x3   :  { %s485_s20 = smov 128   ;;  %s486_s21 = smov 8  }
   0x4   :  { %33 = dma.hbm_to_vmem [thread:$0]  %s26_s14, 8192, %s28_s16, [#allocation5], %s485_s20, %s485_s20, %s486_s21  }
   0x5   :  { %s487_s22 = smov [#allocation2]   ;;  %s38_s26 = sshll.u32 %s525_s2, 4  ;;  %s39_s26 = int_to_ptr.hbm [resolvable:$true] %s38_s26 }
   0x6   :  { %s17_s23 = sshll.u32 %s487_s22, 4  ;;  %s488_s1 = smov [#allocation6]   ;;  %s18_s23 = int_to_ptr.vmem [resolvable:$true] %s17_s23 }
   0x7   :  { %20 = dma.hbm_to_vmem [thread:$0]  %s16_s19, 128, %s18_s23, [#allocation3]  }
   0x8   :  { %s40_s27 = sshll.u32 %s488_s1, 4  ;;  %s489_s28 = smov 16   ;;  %s41_s27 = int_to_ptr.vmem [resolvable:$true] %s40_s27 }
   0x9   :  { %s490_s29 = smov 1  }
   0xa   :  { %46 = dma.hbm_to_vmem [thread:$0]  %s39_s26, 64, %s41_s27, [#allocation5], %s489_s28, %s489_s28, %s490_s29  }
   0xb   :  { %480 = dma.done.wait [#allocation3], 128  }
   0xc   :  { %481 = vsyncadd [#allocation3], 4294967168 }
   0xd   :  { %482 = dma.done.wait [#allocation5], 8256  }
   0xe   :  { %483 = vsyncadd [#allocation5], 4294959040  ;;  %v61_v0 = vld [vmem:[#allocation4 + $0x8] sm:$0xff]  ;;  %v60_v1 = vld [vmem:[#allocation4] sm:$0xff]  ;;  %vm66_vm0 = vcmask 130048  }
   0xf   :  { %84 = vmatpush.msra.mxu0 %v61_v0  ;;  %v59_v2 = vld [vmem:[#allocation2] sm:$0xff]  ;;  %v149_v4 = vld [vmem:[#allocation4 + $0xf0] sm:$0xff]  ;;  %v148_v5 = vld [vmem:[#allocation4 + $0xe8] sm:$0xff] }
  0x10   :  { %v150_v3 = vld [vmem:[#allocation4 + $0xf8] sm:$0xff]  ;;  %v147_v6 = vld [vmem:[#allocation4 + $0xe0] sm:$0xff]  ;;  %v145_v9 = vld [vmem:[#allocation4 + $0xd0] sm:$0xff] }
  0x11   :  { %85 = vmatpush.msra.mxu0 %v60_v1  ;;  %156 = vmatpush.msra.mxu1 %v150_v3  ;;  %v394_v7 = vld [vmem:[#allocation6] ss:$0 sm:$0xff]  ;;  %v146_v8 = vld [vmem:[#allocation4 + $0xd8] sm:$0xff]  ;;  %v144_v11 = vld [vmem:[#allocation4 + $0xc8] sm:$0xff] }
  0x12   :  { %383 = vmatmul.msk.f32.vlgmr.msra.gmra.mxu0 %vm66_vm0, %v59_v2  ;;  %v143_v13 = vld [vmem:[#allocation4 + $0xc0] sm:$0xff]  ;;  %v142_v15 = vld [vmem:[#allocation4 + $0xb8] sm:$0xff]  ;;  %v141_v17 = vld [vmem:[#allocation4 + $0xb0] sm:$0xff] }
  0x13   :  { %157 = vmatpush.msra.mxu1 %v149_v4  ;;  %v140_v19 = vld [vmem:[#allocation4 + $0xa8] sm:$0xff]  ;;  %v139_v22 = vld [vmem:[#allocation4 + $0xa0] sm:$0xff]  ;;  %v138_v25 = vld [vmem:[#allocation4 + $0x98] sm:$0xff] }
  0x14   :  { %v137_v28 = vld [vmem:[#allocation4 + $0x90] sm:$0xff]  ;;  %v136_v31 = vld [vmem:[#allocation4 + $0x88] sm:$0xff]  ;;  %v135_v33 = vld [vmem:[#allocation4 + $0x80] sm:$0xff] }
  0x15   :  { %158 = vmatpush.msra.mxu1 %v148_v5  ;;  %v236_v61 = vld [vmem:[#allocation4 + $0x178] sm:$0xff]  ;;  %v235_v62 = vld [vmem:[#allocation4 + $0x170] sm:$0xff]  ;;  %v234_v63 = vld [vmem:[#allocation4 + $0x168] sm:$0xff] }
  0x16   :  { %242 = vmatpush.msra.mxu2 %v236_v61  ;;  %v395_v0 = vld [vmem:[#allocation6 + $0x1] ss:$0 sm:$0xff]  ;;  %v232_v2 = vld [vmem:[#allocation4 + $0x158] sm:$0xff]  ;;  %v231_v3 = vld [vmem:[#allocation4 + $0x150] sm:$0xff] }
  0x17   :  { %159 = vmatpush.msra.mxu1 %v147_v6  ;;  %v233_v1 = vld [vmem:[#allocation4 + $0x160] sm:$0xff]  ;;  %v230_v6 = vld [vmem:[#allocation4 + $0x148] sm:$0xff]  ;;  %v317_v61 = vld [vmem:[#allocation4 + $0x1d0] sm:$0xff] }
  0x18   :  { %243 = vmatpush.msra.mxu2 %v235_v62 }
  0x19   :  { %160 = vmatpush.msra.mxu1 %v146_v8  ;;  %v229_v8 = vld [vmem:[#allocation4 + $0x140] sm:$0xff] }
  0x1a   :  { %244 = vmatpush.msra.mxu2 %v234_v63 }
  0x1b   :  { %161 = vmatpush.msra.mxu1 %v145_v9 }
  0x1c   :  { %245 = vmatpush.msra.mxu2 %v233_v1 }
  0x1d   :  { %162 = vmatpush.msra.mxu1 %v144_v11 }
  0x1e   :  { %246 = vmatpush.msra.mxu2 %v232_v2  ;;  %v315_v2 = vld [vmem:[#allocation4 + $0x1c0] sm:$0xff] }
  0x1f   :  { %163 = vmatpush.msra.mxu1 %v143_v13 }
  0x20   :  { %247 = vmatpush.msra.mxu2 %v231_v3 }
  0x21   :  { %164 = vmatpush.msra.mxu1 %v142_v15 }
  0x22   :  { %248 = vmatpush.msra.mxu2 %v230_v6  ;;  %v313_v6 = vld [vmem:[#allocation4 + $0x1b0] sm:$0xff] }
  0x23   :  { %165 = vmatpush.msra.mxu1 %v141_v17  ;;  %v225_v17 = vld [vmem:[#allocation4 + $0x120] sm:$0xff] }
  0x24   :  { %249 = vmatpush.msra.mxu2 %v229_v8  ;;  %v312_v8 = vld [vmem:[#allocation4 + $0x1a8] sm:$0xff] }
  0x25   :  { %166 = vmatpush.msra.mxu1 %v140_v19 }
  0x27   :  { %167 = vmatpush.msra.mxu1 %v139_v22  ;;  %v223_v22 = vld [vmem:[#allocation4 + $0x110] sm:$0xff] }
  0x29   :  { %168 = vmatpush.msra.mxu1 %v138_v25  ;;  %v222_v25 = vld [vmem:[#allocation4 + $0x108] sm:$0xff] }
  0x2b   :  { %169 = vmatpush.msra.mxu1 %v137_v28 }
  0x2d   :  { %170 = vmatpush.msra.mxu1 %v136_v31 }
  0x2f   :  { %171 = vmatpush.msra.mxu1 %v135_v33 }
  0x8f   :  { %v87_v10 = vpop.f32.mrf.mxu0 }
  0x90   :  { %v88_v12 = vadd.f32 %v394_v7, %v87_v10  ;;  %v228_v10 = vld [vmem:[#allocation4 + $0x138] sm:$0xff] }
  0x91   :  { %250 = vmatpush.msra.mxu2 %v228_v10 }
  0x92   :  { %v91_v14 = vmul.f32 0.70710677, %v88_v12  ;;  %v90_v58 = vmul.f32 0.5, %v88_v12  ;;  %v227_v12 = vld [vmem:[#allocation4 + $0x130] sm:$0xff] }
  0x93   :  { %251 = vmatpush.msra.mxu2 %v227_v12 }
  0x94   :  { %v92_v16 = vmul.f32 %v91_v14, %v91_v14 }
  0x96   :  { %v93_v18 = vmin.f32 %v92_v16, 16.0 }
  0x98   :  { %v94_v20 = vmul.f32 2.1237322e-06, %v93_v18  ;;  %v105_v21 = vmul.f32 3.8918573e-05, %v93_v18 }
  0x9a   :  { %v95_v23 = vadd.f32 0.00028619796, %v94_v20  ;;  %v106_v24 = vadd.f32 0.001143296, %v105_v21  ;;  %v224_v20 = vld [vmem:[#allocation4 + $0x118] sm:$0xff] }
  0x9c   :  { %v96_v26 = vmul.f32 %v95_v23, %v93_v18  ;;  %v107_v27 = vmul.f32 %v106_v24, %v93_v18 }
  0x9e   :  { %v108_v29 = vadd.f32 0.014752088, %v107_v27  ;;  %v97_v30 = vadd.f32 0.0036580483, %v96_v26  ;;  %v221_v27 = vld [vmem:[#allocation4 + $0x100] sm:$0xff] }
  0xa0   :  { %v109_v32 = vmul.f32 %v108_v29, %v93_v18  ;;  %v98_v35 = vmul.f32 %v97_v30, %v93_v18 }
  0xa2   :  { %v110_v34 = vadd.f32 0.112945676, %v109_v32  ;;  %v99_v38 = vadd.f32 0.05243302, %v98_v35 }
  0xa4   :  { %v111_v36 = vmul.f32 %v110_v34, %v93_v18  ;;  %v100_v41 = vmul.f32 %v99_v38, %v93_v18 }
  0xa6   :  { %v112_v37 = vadd.f32 0.4994258, %v111_v36  ;;  %v101_v42 = vadd.f32 0.18741608, %v100_v41 }
  0xa8   :  { %v113_v39 = vmul.f32 %v112_v37, %v93_v18  ;;  %v102_v44 = vmul.f32 %v101_v42, %v93_v18 }
  0xaa   :  { %v114_v40 = vadd.f32 1.0, %v113_v39  ;;  %v103_v48 = vadd.f32 1.1283791, %v102_v44 }
  0xac   :  { %398 = vrcp.f32 %v114_v40  ;;  %v126_v47 = vand.u32 2147483648, %v114_v40  ;;  %v124_v50 = vand.u32 2147483647, %v114_v40  ;;  %vm120_vm2 = vweird.f32 %v114_v40 }
  0xad   :  { %v104_v53 = vmul.f32 %v103_v48, %v91_v14  ;;  %v226_v14 = vld [vmem:[#allocation4 + $0x128] sm:$0xff] }
  0xae   :  { %v127_v52 = vor.u32 1.1754944e-38, %v126_v47  ;;  %vm125_vm4 = vcmp.eq.f32.partialorder %v124_v50, 8.507059e+37  ;;  %252 = vmatpush.msra.mxu2 %v226_v14  ;;  %v310_v14 = vld [vmem:[#allocation4 + $0x198] sm:$0xff] }
  0xb0   :  { %253 = vmatpush.msra.mxu2 %v225_v17 }
  0xb2   :  { %v399_v43 = vpop.eup %398  ;;  %254 = vmatpush.msra.mxu2 %v224_v20 }
  0xb3   :  { %v116_v45 = vmul.f32 %v399_v43, %v114_v40  ;;  %vm121_vm1 = vweird.f32 %v399_v43 }
  0xb4   :  { %vm122_vm3 = vmor %vm120_vm2, %vm121_vm1  ;;  %255 = vmatpush.msra.mxu2 %v223_v22 }
  0xb5   :  { %v117_v46 = vsub.f32 1.0, %v116_v45 }
  0xb6   :  { %256 = vmatpush.msra.mxu2 %v222_v25 }
  0xb7   :  { %v118_v49 = vmul.f32 %v399_v43, %v117_v46 }
  0xb8   :  { %257 = vmatpush.msra.mxu2 %v221_v27 }
  0xb9   :  { %v119_v51 = vadd.f32 %v399_v43, %v118_v49 }
  0xbb   :  { %v123_v54 = vsel %vm122_vm3, %v399_v43, %v119_v51 }
  0xbc   :  { %v128_v55 = vsel %vm125_vm4, %v127_v52, %v123_v54 }
  0xbd   :  { %v129_v56 = vmul.f32 %v128_v55, %v104_v53  ;;  %v322_v55 = vld [vmem:[#allocation4 + $0x1f8] sm:$0xff] }
  0xbe   :  { %328 = vmatpush.msra.mxu3 %v322_v55 }
  0xbf   :  { %v384_v57 = vclamps-f32 %v129_v56, 1.0  ;;  %v321_v56 = vld [vmem:[#allocation4 + $0x1f0] sm:$0xff] }
  0xc0   :  { %329 = vmatpush.msra.mxu3 %v321_v56 }
  0xc1   :  { %v132_v59 = vadd.f32 1.0, %v384_v57  ;;  %v320_v57 = vld [vmem:[#allocation4 + $0x1e8] sm:$0xff] }
  0xc2   :  { %330 = vmatpush.msra.mxu3 %v320_v57 }
  0xc3   :  { %v133_v60 = vmul.f32 %v132_v59, %v90_v58  ;;  %v396_v58 = vld [vmem:[#allocation6 + $0x2] ss:$0 sm:$0xff] }
  0xc4   :  { %v319_v59 = vld [vmem:[#allocation4 + $0x1e0] sm:$0xff] }
  0xc5   :  { %172 = vmatmul.f32.vlgmr.msra.gmra.mxu1 %v133_v60  ;;  %v318_v60 = vld [vmem:[#allocation4 + $0x1d8] sm:$0xff]  ;;  %331 = vmatpush.msra.mxu3 %v319_v59 }
  0xc7   :  { %332 = vmatpush.msra.mxu3 %v318_v60 }
  0xc9   :  { %333 = vmatpush.msra.mxu3 %v317_v61 }
 0x142   :  { %v173_v4 = vpop.f32.mrf.mxu1 }
 0x143   :  { %v174_v5 = vadd.f32 %v395_v0, %v173_v4  ;;  %v316_v0 = vld [vmem:[#allocation4 + $0x1c8] sm:$0xff]  ;;  %v314_v4 = vld [vmem:[#allocation4 + $0x1b8] sm:$0xff] }
 0x144   :  { %334 = vmatpush.msra.mxu3 %v316_v0 }
 0x145   :  { %v177_v7 = vmul.f32 0.70710677, %v174_v5  ;;  %v176_v52 = vmul.f32 0.5, %v174_v5 }
 0x146   :  { %335 = vmatpush.msra.mxu3 %v315_v2 }
 0x147   :  { %v178_v9 = vmul.f32 %v177_v7, %v177_v7 }
 0x148   :  { %336 = vmatpush.msra.mxu3 %v314_v4 }
 0x149   :  { %v179_v11 = vmin.f32 %v178_v9, 16.0 }
 0x14a   :  { %337 = vmatpush.msra.mxu3 %v313_v6 }
 0x14b   :  { %v180_v13 = vmul.f32 2.1237322e-06, %v179_v11  ;;  %v191_v15 = vmul.f32 3.8918573e-05, %v179_v11 }
 0x14c   :  { %338 = vmatpush.msra.mxu3 %v312_v8 }
 0x14d   :  { %v181_v16 = vadd.f32 0.00028619796, %v180_v13  ;;  %v192_v18 = vadd.f32 0.001143296, %v191_v15 }
 0x14f   :  { %v182_v19 = vmul.f32 %v181_v16, %v179_v11  ;;  %v193_v21 = vmul.f32 %v192_v18, %v179_v11  ;;  %v309_v16 = vld [vmem:[#allocation4 + $0x190] sm:$0xff] }
 0x151   :  { %v194_v23 = vadd.f32 0.014752088, %v193_v21  ;;  %v183_v24 = vadd.f32 0.0036580483, %v182_v19  ;;  %v308_v19 = vld [vmem:[#allocation4 + $0x188] sm:$0xff]  ;;  %v307_v21 = vld [vmem:[#allocation4 + $0x180] sm:$0xff] }
 0x153   :  { %v195_v26 = vmul.f32 %v194_v23, %v179_v11  ;;  %v184_v29 = vmul.f32 %v183_v24, %v179_v11 }
 0x155   :  { %v196_v28 = vadd.f32 0.112945676, %v195_v26  ;;  %v185_v32 = vadd.f32 0.05243302, %v184_v29 }
 0x157   :  { %v197_v30 = vmul.f32 %v196_v28, %v179_v11  ;;  %v186_v35 = vmul.f32 %v185_v32, %v179_v11 }
 0x159   :  { %v198_v31 = vadd.f32 0.4994258, %v197_v30  ;;  %v187_v36 = vadd.f32 0.18741608, %v186_v35 }
 0x15b   :  { %v199_v33 = vmul.f32 %v198_v31, %v179_v11  ;;  %v188_v38 = vmul.f32 %v187_v36, %v179_v11  ;;  %v311_v11 = vld [vmem:[#allocation4 + $0x1a0] sm:$0xff] }
 0x15c   :  { %339 = vmatpush.msra.mxu3 %v311_v11 }
 0x15d   :  { %v200_v34 = vadd.f32 1.0, %v199_v33  ;;  %v189_v42 = vadd.f32 1.1283791, %v188_v38 }
 0x15e   :  { %340 = vmatpush.msra.mxu3 %v310_v14 }
 0x15f   :  { %400 = vrcp.f32 %v200_v34  ;;  %v212_v41 = vand.u32 2147483648, %v200_v34  ;;  %v210_v44 = vand.u32 2147483647, %v200_v34  ;;  %vm206_vm6 = vweird.f32 %v200_v34 }
 0x160   :  { %v190_v47 = vmul.f32 %v189_v42, %v177_v7  ;;  %341 = vmatpush.msra.mxu3 %v309_v16 }
 0x161   :  { %v213_v46 = vor.u32 1.1754944e-38, %v212_v41  ;;  %vm211_vm8 = vcmp.eq.f32.partialorder %v210_v44, 8.507059e+37 }
 0x162   :  { %342 = vmatpush.msra.mxu3 %v308_v19 }
 0x164   :  { %343 = vmatpush.msra.mxu3 %v307_v21 }
 0x165   :  { %v401_v37 = vpop.eup %400 }
 0x166   :  { %v202_v39 = vmul.f32 %v401_v37, %v200_v34  ;;  %vm207_vm5 = vweird.f32 %v401_v37 }
 0x167   :  { %vm208_vm7 = vmor %vm206_vm6, %vm207_vm5 }
 0x168   :  { %v203_v40 = vsub.f32 1.0, %v202_v39 }
 0x16a   :  { %v204_v43 = vmul.f32 %v401_v37, %v203_v40 }
 0x16c   :  { %v205_v45 = vadd.f32 %v401_v37, %v204_v43 }
 0x16e   :  { %v209_v48 = vsel %vm208_vm7, %v401_v37, %v205_v45 }
 0x16f   :  { %v214_v49 = vsel %vm211_vm8, %v213_v46, %v209_v48 }
 0x170   :  { %v215_v50 = vmul.f32 %v214_v49, %v190_v47  ;;  %v348_v49 = vlaneseq }
 0x172   :  { %v385_v51 = vclamps-f32 %v215_v50, 1.0  ;;  %v349_v50 = vand.u32 127, %v348_v49 }
 0x174   :  { %v218_v53 = vadd.f32 1.0, %v385_v51  ;;  %v397_v51 = vld [vmem:[#allocation6 + $0x3] ss:$0 sm:$0xff]  ;;  %vm350_vm13 = vcmp.lt.s32.totalorder %v349_v50, 8  ;;  %vm374_vm2 = vcmp.eq.s32.totalorder %v349_v50, 8 }
 0x176   :  { %v219_v54 = vmul.f32 %v218_v53, %v176_v52 }
 0x178   :  { %258 = vmatmul.f32.vlgmr.msra.gmra.mxu2 %v219_v54 }
 0x1fb   :  { %v259_v62 = vpop.f32.mrf.mxu2 }
 0x1fc   :  { %v260_v63 = vadd.f32 %v396_v58, %v259_v62 }
 0x1fe   :  { %v263_v1 = vmul.f32 0.70710677, %v260_v63  ;;  %v262_v46 = vmul.f32 0.5, %v260_v63 }
 0x200   :  { %v264_v3 = vmul.f32 %v263_v1, %v263_v1 }
 0x202   :  { %v265_v5 = vmin.f32 %v264_v3, 16.0 }
 0x204   :  { %v266_v7 = vmul.f32 2.1237322e-06, %v265_v5  ;;  %v277_v9 = vmul.f32 3.8918573e-05, %v265_v5 }
 0x206   :  { %v267_v10 = vadd.f32 0.00028619796, %v266_v7  ;;  %v278_v12 = vadd.f32 0.001143296, %v277_v9 }
 0x208   :  { %v268_v13 = vmul.f32 %v267_v10, %v265_v5  ;;  %v279_v15 = vmul.f32 %v278_v12, %v265_v5 }
 0x20a   :  { %v280_v17 = vadd.f32 0.014752088, %v279_v15  ;;  %v269_v18 = vadd.f32 0.0036580483, %v268_v13 }
 0x20c   :  { %v281_v20 = vmul.f32 %v280_v17, %v265_v5  ;;  %v270_v23 = vmul.f32 %v269_v18, %v265_v5 }
 0x20e   :  { %v282_v22 = vadd.f32 0.112945676, %v281_v20  ;;  %v271_v26 = vadd.f32 0.05243302, %v270_v23 }
 0x210   :  { %v283_v24 = vmul.f32 %v282_v22, %v265_v5  ;;  %v272_v29 = vmul.f32 %v271_v26, %v265_v5 }
 0x212   :  { %v284_v25 = vadd.f32 0.4994258, %v283_v24  ;;  %v273_v30 = vadd.f32 0.18741608, %v272_v29 }
 0x214   :  { %v285_v27 = vmul.f32 %v284_v25, %v265_v5  ;;  %v274_v32 = vmul.f32 %v273_v30, %v265_v5 }
 0x216   :  { %v286_v28 = vadd.f32 1.0, %v285_v27  ;;  %v275_v36 = vadd.f32 1.1283791, %v274_v32 }
 0x218   :  { %402 = vrcp.f32 %v286_v28  ;;  %v298_v35 = vand.u32 2147483648, %v286_v28  ;;  %v296_v38 = vand.u32 2147483647, %v286_v28  ;;  %vm292_vm10 = vweird.f32 %v286_v28 }
 0x219   :  { %v276_v41 = vmul.f32 %v275_v36, %v263_v1 }
 0x21a   :  { %v299_v40 = vor.u32 1.1754944e-38, %v298_v35  ;;  %vm297_vm12 = vcmp.eq.f32.partialorder %v296_v38, 8.507059e+37 }
 0x21e   :  { %v403_v31 = vpop.eup %402 }
 0x21f   :  { %v288_v33 = vmul.f32 %v403_v31, %v286_v28  ;;  %vm293_vm9 = vweird.f32 %v403_v31 }
 0x220   :  { %vm294_vm11 = vmor %vm292_vm10, %vm293_vm9 }
 0x221   :  { %v289_v34 = vsub.f32 1.0, %v288_v33 }
 0x223   :  { %v290_v37 = vmul.f32 %v403_v31, %v289_v34 }
 0x225   :  { %v291_v39 = vadd.f32 %v403_v31, %v290_v37 }
 0x227   :  { %v295_v42 = vsel %vm294_vm11, %v403_v31, %v291_v39 }
 0x228   :  { %v300_v43 = vsel %vm297_vm12, %v299_v40, %v295_v42 }
 0x229   :  { %v301_v44 = vmul.f32 %v300_v43, %v276_v41 }
 0x22b   :  { %v386_v45 = vclamps-f32 %v301_v44, 1.0 }
 0x22d   :  { %v304_v47 = vadd.f32 1.0, %v386_v45 }
 0x22f   :  { %v305_v48 = vmul.f32 %v304_v47, %v262_v46 }
 0x231   :  { %344 = vmatmul.f32.vlgmr.msra.gmra.mxu3 %v305_v48 }
 0x2b4   :  { %v345_v52 = vpop.f32.mrf.mxu3 }
 0x2b5   :  { %v346_v53 = vadd.f32 %v397_v51, %v345_v52 }
 0x2b7   :  { %v351_v54 = vsel %vm350_vm13, %v346_v53, -inf }
 0x2b8   :  { %352 = vmax.xlane.f32.xlu0 %v351_v54 }
 0x32b   :  { %v353_v55 = vpop.xlane.xlu0 %352 }
 0x32c   :  { %v354_v56 = vsub.f32 %v351_v54, %v353_v55 }
 0x32e   :  { %v355_v57 = vmul.f32 1.442695, %v354_v56 }
 0x330   :  { %404 = vpow2.f32 %v355_v57 }
 0x336   :  { %v405_v58 = vpop.eup %404 }
 0x337   :  { %357 = vadd.xlane.f32.xlu0 %v405_v58 }
 0x3aa   :  { %v358_v59 = vpop.xlane.xlu0 %357 }
 0x3ab   :  { %406 = vrcp.f32 %v358_v59  ;;  %v370_v63 = vand.u32 2147483648, %v358_v59  ;;  %v368_v1 = vand.u32 2147483647, %v358_v59  ;;  %vm364_vm15 = vweird.f32 %v358_v59 }
 0x3ad   :  { %v371_v3 = vor.u32 1.1754944e-38, %v370_v63  ;;  %vm369_vm1 = vcmp.eq.f32.partialorder %v368_v1, 8.507059e+37 }
 0x3b1   :  { %v407_v60 = vpop.eup %406 }
 0x3b2   :  { %v360_v61 = vmul.f32 %v407_v60, %v358_v59  ;;  %vm365_vm14 = vweird.f32 %v407_v60 }
 0x3b3   :  { %vm366_vm0 = vmor %vm364_vm15, %vm365_vm14 }
 0x3b4   :  { %v361_v62 = vsub.f32 1.0, %v360_v61 }
 0x3b6   :  { %v362_v0 = vmul.f32 %v407_v60, %v361_v62 }
 0x3b8   :  { %v363_v2 = vadd.f32 %v407_v60, %v362_v0 }
 0x3ba   :  { %v367_v4 = vsel %vm366_vm0, %v407_v60, %v363_v2 }
 0x3bb   :  { %v372_v5 = vsel %vm369_vm1, %v371_v3, %v367_v4 }
 0x3bc   :  { %v373_v6 = vmul.f32 %v405_v58, %v372_v5 }
 0x3be   :  { %v375_v7 = vsel %vm374_vm2, %v346_v53, %v373_v6 }
 0x3bf   :  { %376 = vst [vmem:[%s526_s3] sm:$0xff] %v375_v7 }
 0x3c0   :  { %381 = vsyncpa [#allocation3], 1 }
 0x3c1   :  { %382 = vsyncpa [#allocation5], 1 }

</bundles_post_ra>
